<compile_context>
chip_gen: v7x
topology: tpu7x:2x2x1
jax: 0.10.0
libtpu: 0.0.40
codegen_flags: <defaults>
</compile_context>

<pallas_src>
import functools
import math

import jax
import jax.numpy as jnp
from jax import lax
from jax.experimental import pallas as pl
from jax.experimental.pallas import tpu as pltpu


def _channel_attention_kernel(x_ref, w1_ref, w2_ref, o_ref, sum_ref, max_ref,
                              *, hw_total, hw_tile, has_partial):
    # x_ref:   (b_blk, C, hw_tile)  NCHW-native tile: C on sublanes, HW on lanes.
    # w1_ref:  (C_r, C)             first 1x1-conv weight (untransposed).
    # w2_ref:  (C, C_r)             second 1x1-conv weight (untransposed).
    # o_ref:   (b_blk, C)           attention weights (middle output dim squeezed).
    # sum_ref: (b_blk, C) f32       running spatial sum (VMEM scratch).
    # max_ref: (b_blk, C) f32       running spatial max (VMEM scratch).
    hi = pl.program_id(1)
    n_hw = pl.num_programs(1)

    x = x_ref[...]

    if has_partial:
        # HW is not a multiple of hw_tile: the final spatial block reads past
        # the array end (unspecified lanes).  Mask them: 0 for the sum,
        # dtype-min for the max.  For every non-final block the compare is
        # all-true, so this stays branch-free and correct on all steps.
        pos = lax.broadcasted_iota(jnp.int32, (1, 1, hw_tile), 2)
        valid = (hi * hw_tile + pos) < hw_total
        if jnp.issubdtype(x.dtype, jnp.floating):
            fill = float(jnp.finfo(x.dtype).min)
        else:
            fill = int(jnp.iinfo(x.dtype).min)
        x_sum = jnp.where(valid, x, 0)
        x_max = jnp.where(valid, x, fill)
    else:
        x_sum = x
        x_max = x

    part_sum = jnp.sum(x_sum, axis=-1, dtype=jnp.float32)     # f32 accumulation
    part_max = jnp.max(x_max, axis=-1).astype(jnp.float32)    # (b_blk, C)

    @pl.when(hi == 0)
    def _():
        sum_ref[...] = part_sum
        max_ref[...] = part_max

    @pl.when(hi > 0)
    def _():
        sum_ref[...] = sum_ref[...] + part_sum
        max_ref[...] = jnp.maximum(max_ref[...], part_max)

    @pl.when(hi == n_hw - 1)
    def _():
        avg = sum_ref[...] * (1.0 / hw_total)                  # exact mean, (b_blk, C)
        mx = max_ref[...]
        w1 = w1_ref[...].astype(jnp.float32)                   # (C_r, C)
        w2 = w2_ref[...].astype(jnp.float32)                   # (C, C_r)

        nt = (((1,), (1,)), ((), ()))                          # contract dim 1 of both (NT matmul)
        h = jnp.maximum(
            lax.dot_general(avg, w1, nt, preferred_element_type=jnp.float32), 0.0)
        h = h + jnp.maximum(
            lax.dot_general(mx, w1, nt, preferred_element_type=jnp.float32), 0.0)
        # fc2(relu(fc1(avg))) + fc2(relu(fc1(max))) == fc2(relu(fc1(avg)) + relu(fc1(max)))
        out = lax.dot_general(h, w2, nt, preferred_element_type=jnp.float32)
        o_ref[...] = jax.nn.sigmoid(out).astype(o_ref.dtype)


def _largest_divisor_not_above(n, cap):
    cap = max(1, min(int(cap), int(n)))
    for d in range(cap, 0, -1):
        if n % d == 0:
            return d
    return 1


def channel_attention(x_nchw, w1, w2, *, hw_tile=None, b_blk=None,
                      max_block_bytes=8 * 1024 * 1024):
    """CBAM channel attention.  x_nchw: (B, C, H, W); w1: (C//r, C); w2: (C, C//r).

    Returns the attention map of shape (B, C, 1, 1), dtype of x.
    """
    B, C, H, W = x_nchw.shape
    C_r = w1.shape[0]
    HW = H * W
    itemsize = jnp.dtype(x_nchw.dtype).itemsize

    # Free view of the NCHW tensor -- no HBM transpose, single pass over x.
    x_k = x_nchw.reshape(B, C, HW)

    hw_padded = ((HW + 127) // 128) * 128        # lane-aligned spatial extent

    # --- Spatial tile: as large as the block budget allows at b_blk=1
    # (lane-aligned).  Large hw_tile amortizes the ~0.35 us/step overhead and
    # dilutes the per-step cross-lane (XLU) reduction.
    if hw_tile is None:
        cap = max(128, (max_block_bytes // max(1, C * itemsize)) // 128 * 128)
        hw_tile = min(hw_padded, cap)
    else:
        assert hw_tile % 128 == 0 and hw_tile >= 128, "hw_tile must be a multiple of 128"
        hw_tile = min(hw_tile, hw_padded)
    n_hw = (HW + hw_tile - 1) // hw_tile
    has_partial = (HW % hw_tile) != 0            # last spatial block needs lane masking

    # --- Batch block: divisor of B (no partial batch blocks), capped by the
    # remaining block budget and by B//2 so the "parallel" batch axis has at
    # least 2 steps (keeps both v7x TensorCores busy for small batches).
    if b_blk is None:
        by_budget = max(1, max_block_bytes // max(1, C * hw_tile * itemsize))
        by_megacore = max(1, B // 2) if B >= 2 else 1
        b_blk = _largest_divisor_not_above(B, min(by_budget, by_megacore))
    else:
        assert B % b_blk == 0, "b_blk must divide B"

    # --- VMEM budget: double-buffered x blocks + weights + output + scratch.
    # The default scoped limit (16 MiB v5e, 32 MiB v6e/v7x) could reject the
    # bigger blocks; stay well under v7x's 64 MiB physical VMEM ceiling.
    x_block_bytes = b_blk * C * hw_tile * itemsize
    w_bytes = (int(w1.size) * jnp.dtype(w1.dtype).itemsize
               + int(w2.size) * jnp.dtype(w2.dtype).itemsize)
    out_block_bytes = b_blk * C * itemsize
    scratch_bytes = 2 * b_blk * C * 4
    needed = 2 * (x_block_bytes + w_bytes + out_block_bytes) + scratch_bytes + (2 << 20)
    vmem_limit = int(min(max(needed, 20 << 20), 60 << 20))

    kernel = functools.partial(
        _channel_attention_kernel,
        hw_total=int(HW), hw_tile=int(hw_tile), has_partial=bool(has_partial))

    # Advisory: this custom call is dominated by one full HBM read of x.
    cost = pl.CostEstimate(
        flops=int(2 * B * C * HW + 6 * B * C * C_r),
        transcendentals=int(B * C),
        bytes_accessed=int(int(x_k.size) * itemsize + w_bytes + B * C * itemsize),
    )

    out = pl.pallas_call(
        kernel,
        out_shape=jax.ShapeDtypeStruct((B, 1, C), x_nchw.dtype),
        grid_spec=pltpu.PrefetchScalarGridSpec(
            num_scalar_prefetch=0,
            grid=(B // b_blk, n_hw),
            in_specs=[
                pl.BlockSpec((b_blk, C, hw_tile), lambda b, h: (b, 0, h)),
                pl.BlockSpec((C_r, C), lambda b, h: (0, 0)),
                pl.BlockSpec((C, C_r), lambda b, h: (0, 0)),
            ],
            # Middle dim squeezed -> b_blk is a leading, unconstrained block
            # dim (no multiple-of-8 requirement on the batch block).
            out_specs=pl.BlockSpec((b_blk, None, C), lambda b, h: (b, 0, 0)),
            scratch_shapes=[
                pltpu.VMEM((b_blk, C), jnp.float32),   # running spatial sum
                pltpu.VMEM((b_blk, C), jnp.float32),   # running spatial max
            ],
        ),
        compiler_params=pltpu.CompilerParams(
            dimension_semantics=("parallel", "arbitrary"),
            vmem_limit_bytes=vmem_limit,
        ),
        cost_estimate=cost,
    )(x_k, w1, w2)

    return out.reshape(B, C, 1, 1)


def _reference(x_nchw, w1, w2):
    # Pure-JAX reference of the PyTorch forward.
    B, C, H, W = x_nchw.shape
    xf = x_nchw.reshape(B, C, H * W)
    avg = jnp.mean(xf, axis=-1)                       # (B, C)
    mx = jnp.max(xf, axis=-1)                         # (B, C)

    def fc(v):                                        # v: (B, C)
        h = jnp.maximum(v @ w1.T, 0.0)                # (B, C_r)
        return h @ w2.T                               # (B, C)

    out = jax.nn.sigmoid(fc(avg) + fc(mx))            # (B, C)
    return out.reshape(B, C, 1, 1)


if __name__ == "__main__":
    B, C, H, W = 2, 32, 16, 16
    reduction_ratio = 16
    C_r = C // reduction_ratio

    key = jax.random.PRNGKey(0)
    kx, k1, k2, kx2 = jax.random.split(key, 4)

    x = jax.random.normal(kx, (B, C, H, W), dtype=jnp.float32)

    # Deterministic init mimicking PyTorch Conv2d default (uniform, 1/sqrt(fan_in)).
    bound1 = 1.0 / math.sqrt(C)
    bound2 = 1.0 / math.sqrt(C_r)
    w1 = jax.random.uniform(k1, (C_r, C), jnp.float32, -bound1, bound1)  # Conv2d(C, C_r, 1)
    w2 = jax.random.uniform(k2, (C, C_r), jnp.float32, -bound2, bound2)  # Conv2d(C_r, C, 1)

    ref = _reference(x, w1, w2)

    # Auto config (single spatial block per batch element here).
    out_auto = jax.block_until_ready(channel_attention(x, w1, w2))
    assert out_auto.shape == (B, C, 1, 1)
    assert jnp.allclose(out_auto, ref, atol=1e-5, rtol=1e-5), "auto mismatch vs reference"

    # Forced small spatial tile -> exercises the multi-step running sum/max path.
    out_tiled = jax.block_until_ready(channel_attention(x, w1, w2, hw_tile=128))
    assert jnp.allclose(out_tiled, ref, atol=1e-5, rtol=1e-5), "tiled mismatch vs reference"

    # Spatial extent not a multiple of 128 -> exercises masked partial tile path.
    x2 = jax.random.normal(kx2, (B, C, 13, 13), dtype=jnp.float32)
    ref2 = _reference(x2, w1, w2)
    out2 = jax.block_until_ready(channel_attention(x2, w1, w2, hw_tile=128))
    assert jnp.allclose(out2, ref2, atol=1e-5, rtol=1e-5), "masked partial-tile mismatch"

    print("KERNEL_OK")
</pallas_src>

<mosaic_0001>
module attributes {stable_mosaic.version = 11 : i64} {
  func.func @_channel_attention_kernel(%arg0: i32, %arg1: i32, %arg2: memref<1x32x256xf32, #tpu.memory_space<vmem>>, %arg3: memref<2x32xf32, #tpu.memory_space<vmem>>, %arg4: memref<32x2xf32, #tpu.memory_space<vmem>>, %arg5: memref<1x1x32xf32, #tpu.memory_space<vmem>>, %arg6: memref<1x32xf32, #tpu.memory_space<vmem>>, %arg7: memref<1x32xf32, #tpu.memory_space<vmem>>) attributes {dimension_semantics = [#tpu.dimension_semantics<parallel>, #tpu.dimension_semantics<arbitrary>], iteration_bounds = array<i64: 2, 1>, scalar_prefetch = 0 : i64, scratch_operands = 2 : i64, tpu.core_type = #tpu.core_type<tc>, window_params = [{transform_indices = @transform_0, window_bounds = array<i64: 1, 32, 256>}, {pipeline_mode = #tpu.pipeline_mode<synchronous>, transform_indices = @transform_1, window_bounds = array<i64: 2, 32>}, {pipeline_mode = #tpu.pipeline_mode<synchronous>, transform_indices = @transform_2, window_bounds = array<i64: 32, 2>}, {transform_indices = @transform_3, window_bounds = array<i64: 1, 1, 32>}]} {
    %c0 = arith.constant 0 : index
    %c0_0 = arith.constant 0 : index
    %c0_1 = arith.constant 0 : index
    %0 = vector.load %arg2[%c0, %c0_0, %c0_1] : memref<1x32x256xf32, #tpu.memory_space<vmem>>, vector<1x32x256xf32>
    %cst = arith.constant dense<0.000000e+00> : vector<1x32xf32>
    %1 = vector.multi_reduction <add>, %0, %cst [2] : vector<1x32x256xf32> to vector<1x32xf32>
    %cst_2 = arith.constant dense<0xFF800000> : vector<1x32xf32>
    %2 = vector.multi_reduction <maximumf>, %0, %cst_2 [2] : vector<1x32x256xf32> to vector<1x32xf32>
    %c0_i32 = arith.constant 0 : i32
    %3 = arith.cmpi eq, %arg1, %c0_i32 : i32
    %4 = arith.extui %3 : i1 to i32
    %c0_i32_3 = arith.constant 0 : i32
    %5 = arith.cmpi ne, %4, %c0_i32_3 : i32
    scf.if %5 {
      %c0_8 = arith.constant 0 : index
      %c0_9 = arith.constant 0 : index
      %12 = vector.load %arg6[%c0_8, %c0_9] : memref<1x32xf32, #tpu.memory_space<vmem>>, vector<1x32xf32>
      tpu.vector_store %arg6[%c0_8, %c0_9], %1 {strides = array<i32>} : memref<1x32xf32, #tpu.memory_space<vmem>>, vector<1x32xf32>,
      %c0_10 = arith.constant 0 : index
      %c0_11 = arith.constant 0 : index
      %13 = vector.load %arg7[%c0_10, %c0_11] : memref<1x32xf32, #tpu.memory_space<vmem>>, vector<1x32xf32>
      tpu.vector_store %arg7[%c0_10, %c0_11], %2 {strides = array<i32>} : memref<1x32xf32, #tpu.memory_space<vmem>>, vector<1x32xf32>,
    } else {
    }
    %c0_i32_4 = arith.constant 0 : i32
    %6 = arith.cmpi sgt, %arg1, %c0_i32_4 : i32
    %7 = arith.extui %6 : i1 to i32
    %c0_i32_5 = arith.constant 0 : i32
    %8 = arith.cmpi ne, %7, %c0_i32_5 : i32
    scf.if %8 {
      %c0_8 = arith.constant 0 : index
      %c0_9 = arith.constant 0 : index
      %12 = vector.load %arg6[%c0_8, %c0_9] : memref<1x32xf32, #tpu.memory_space<vmem>>, vector<1x32xf32>
      %13 = arith.addf %12, %1 : vector<1x32xf32>
      %c0_10 = arith.constant 0 : index
      %c0_11 = arith.constant 0 : index
      %14 = vector.load %arg6[%c0_10, %c0_11] : memref<1x32xf32, #tpu.memory_space<vmem>>, vector<1x32xf32>
      tpu.vector_store %arg6[%c0_10, %c0_11], %13 {strides = array<i32>} : memref<1x32xf32, #tpu.memory_space<vmem>>, vector<1x32xf32>,
      %c0_12 = arith.constant 0 : index
      %c0_13 = arith.constant 0 : index
      %15 = vector.load %arg7[%c0_12, %c0_13] : memref<1x32xf32, #tpu.memory_space<vmem>>, vector<1x32xf32>
      %16 = arith.maximumf %15, %2 : vector<1x32xf32>
      %c0_14 = arith.constant 0 : index
      %c0_15 = arith.constant 0 : index
      %17 = vector.load %arg7[%c0_14, %c0_15] : memref<1x32xf32, #tpu.memory_space<vmem>>, vector<1x32xf32>
      tpu.vector_store %arg7[%c0_14, %c0_15], %16 {strides = array<i32>} : memref<1x32xf32, #tpu.memory_space<vmem>>, vector<1x32xf32>,
    } else {
    }
    %c0_i32_6 = arith.constant 0 : i32
    %9 = arith.cmpi eq, %arg1, %c0_i32_6 : i32
    %10 = arith.extui %9 : i1 to i32
    %c0_i32_7 = arith.constant 0 : i32
    %11 = arith.cmpi ne, %10, %c0_i32_7 : i32
    scf.if %11 {
      %c0_8 = arith.constant 0 : index
      %c0_9 = arith.constant 0 : index
      %12 = vector.load %arg6[%c0_8, %c0_9] : memref<1x32xf32, #tpu.memory_space<vmem>>, vector<1x32xf32>
      %cst_10 = arith.constant 3.906250e-03 : f32
      %13 = vector.broadcast %cst_10 : f32 to vector<1x32xf32>
      %14 = arith.mulf %12, %13 : vector<1x32xf32>
      %c0_11 = arith.constant 0 : index
      %c0_12 = arith.constant 0 : index
      %15 = vector.load %arg7[%c0_11, %c0_12] : memref<1x32xf32, #tpu.memory_space<vmem>>, vector<1x32xf32>
      %c0_13 = arith.constant 0 : index
      %c0_14 = arith.constant 0 : index
      %16 = vector.load %arg3[%c0_13, %c0_14] : memref<2x32xf32, #tpu.memory_space<vmem>>, vector<2x32xf32>
      %c0_15 = arith.constant 0 : index
      %c0_16 = arith.constant 0 : index
      %17 = vector.load %arg4[%c0_15, %c0_16] : memref<32x2xf32, #tpu.memory_space<vmem>>, vector<32x2xf32>
      %cst_17 = arith.constant dense<0.000000e+00> : vector<1x2xf32>
      %18 = tpu.matmul %14, %16, %cst_17 {dimension_numbers = #tpu.dot_dimension_numbers<[1], [1], [0], [0], [0, 0, 1, 0], [], []>} : vector<1x32xf32>, vector<2x32xf32>, vector<1x2xf32> -> vector<1x2xf32>
      %cst_18 = arith.constant 0.000000e+00 : f32
      %19 = vector.broadcast %cst_18 : f32 to vector<1x2xf32>
      %20 = arith.maximumf %18, %19 : vector<1x2xf32>
      %cst_19 = arith.constant dense<0.000000e+00> : vector<1x2xf32>
      %21 = tpu.matmul %15, %16, %cst_19 {dimension_numbers = #tpu.dot_dimension_numbers<[1], [1], [0], [0], [0, 0, 1, 0], [], []>} : vector<1x32xf32>, vector<2x32xf32>, vector<1x2xf32> -> vector<1x2xf32>
      %cst_20 = arith.constant 0.000000e+00 : f32
      %22 = vector.broadcast %cst_20 : f32 to vector<1x2xf32>
      %23 = arith.maximumf %21, %22 : vector<1x2xf32>
      %24 = arith.addf %20, %23 : vector<1x2xf32>
      %cst_21 = arith.constant dense<0.000000e+00> : vector<1x32xf32>
      %25 = tpu.matmul %24, %17, %cst_21 {dimension_numbers = #tpu.dot_dimension_numbers<[1], [1], [0], [0], [0, 0, 1, 0], [], []>} : vector<1x2xf32>, vector<32x2xf32>, vector<1x32xf32> -> vector<1x32xf32>
      %26 = arith.negf %25 : vector<1x32xf32>
      %27 = math.exp %26 : vector<1x32xf32>
      %cst_22 = arith.constant 1.000000e+00 : f32
      %28 = vector.broadcast %cst_22 : f32 to vector<1x32xf32>
      %29 = arith.addf %28, %27 : vector<1x32xf32>
      %30 = arith.divf %28, %29 : vector<1x32xf32>
      %c0_23 = arith.constant 0 : index
      %c0_24 = arith.constant 0 : index
      %c0_25 = arith.constant 0 : index
      %31 = vector.load %arg5[%c0_23, %c0_24, %c0_25] : memref<1x1x32xf32, #tpu.memory_space<vmem>>, vector<1x1x32xf32>
      %32 = vector.shape_cast %31 : vector<1x1x32xf32> to vector<1x32xf32>
      %33 = vector.shape_cast %30 : vector<1x32xf32> to vector<1x1x32xf32>
      tpu.vector_store %arg5[%c0_23, %c0_24, %c0_25], %33 {strides = array<i32>} : memref<1x1x32xf32, #tpu.memory_space<vmem>>, vector<1x1x32xf32>,
    } else {
    }
    return
  }
  func.func @transform_0(%arg0: i32, %arg1: i32) -> (i32, i32, i32) {
    %c0_i32 = arith.constant 0 : i32
    %c0_i32_0 = arith.constant 0 : i32
    return %arg0, %c0_i32, %arg1 : i32, i32, i32
  }
  func.func @transform_1(%arg0: i32, %arg1: i32) -> (i32, i32) {
    %c0_i32 = arith.constant 0 : i32
    %c0_i32_0 = arith.constant 0 : i32
    %c0_i32_1 = arith.constant 0 : i32
    return %c0_i32, %c0_i32_0 : i32, i32
  }
  func.func @transform_2(%arg0: i32, %arg1: i32) -> (i32, i32) {
    %c0_i32 = arith.constant 0 : i32
    %c0_i32_0 = arith.constant 0 : i32
    %c0_i32_1 = arith.constant 0 : i32
    return %c0_i32, %c0_i32_0 : i32, i32
  }
  func.func @transform_3(%arg0: i32, %arg1: i32) -> (i32, i32, i32) {
    %c0_i32 = arith.constant 0 : i32
    %c0_i32_0 = arith.constant 0 : i32
    %c0_i32_1 = arith.constant 0 : i32
    return %arg0, %c0_i32, %c0_i32_0 : i32, i32, i32
  }
}

</mosaic_0001>

<bundles_post_ra>
// kernel: tpu_custom_call.1
= control target key start
LH: loop header
LB: loop body
LE: loop exit
PB: predicated region body
PF: predicated region fallthrough
CT: control target
= control target key end

     0   :  { %8 = vsyncpa [#allocation5], 0  ;;  %s1904_s0 = inlined_call_operand.hbm [shape: f32[2,32,256], index: 0, kind: input, shape index: {}]   ;;  %s1905_s1 = inlined_call_operand.vmem [shape: f32[2,32], index: 1, kind: input, shape index: {}]   ;;  %s1906_s2 = inlined_call_operand.vmem [shape: f32[32,2], index: 2, kind: input, shape index: {}]   ;;  %s1907_s3 = inlined_call_operand.hbm [shape: f32[2,1,32], index: 3, kind: output, shape index: {}]  }
   0x1   :  { %10 = vsyncpa [#allocation5 + $0x1], 0 }
   0x2   :  { %11 = vsyncpa [#allocation6], 0 }
   0x3   :  { %13 = vsyncpa [#allocation6 + $0x1], 0  ;;  %s1688_s12 = smov 0   ;;  %s1690_s13 = smov 0  }
   0x4   :  { %s1692_s14 = smov 0   ;;  %s1694_s15 = smov 0  }
   0x5   :  { %s1696_s16 = smov 0   ;;  %s1698_s17 = smov 0  }
   0x6 LB: > { %s1415_s18 = sadd.s32 4294967295, %s1659_s17   ;;  %s1416_s19 = sadd.s32 4294967294, %s1659_s17   ;;  %s1659_s17 = sphi %s1698_s17, %s19_s17   ;;  %s1655_s16 = sphi %s1696_s16, %s1924_s16   ;;  %s1651_s15 = sphi %s1694_s15, %s1923_s15   ;;  %s1647_s14 = sphi %s1692_s14, %s1922_s14   ;;  %s1643_s13 = sphi %s1690_s13, %s1921_s13   ;;  %s1639_s12 = sphi %s1688_s12, %s1920_s12  }
   0x7   : > { %s31_s20 = sadd.s32 1, %s1655_s16  ;;  %s40_s21 = sadd.s32 1, %s1647_s14 }
   0x8   : > { %p33_p0 = scmp.ge.s32.totalorder %s31_s20, 2  ;;  %p47_p1 = scmp.ne.s32.totalorder %s1647_s14, %s1643_s13 }
   0x9   : > { %p48_p2 = scmp.eq.s32.totalorder %s1659_s17, 0  ;;  %p53_p3 = scmp.ne.s32.totalorder %s1643_s13, %s1639_s12 }
   0xa   : > { %s1926_s20 = smov (%p33_p0, %s31_s20), 0  ;;  %p54_p5 = scmp.eq.s32.totalorder %s1415_s18, 0 }
   0xb   : > { %p1729_p4 = por %p48_p2, %p47_p1  ;;  %s35_s23 = ssub.s32 %s1655_s16, %s1926_s20 }
   0xc   : > { %p119_p6 = scmp.eq.s32.totalorder %s1415_s18, 1  ;;  %p38_p7 = scmp.eq.s32.totalorder %s35_s23, 0 }
   0xd   : > { %p1735_p8 = por %p54_p5, %p53_p3  ;;  %p125_p10 = scmp.eq.s32.totalorder %s1416_s19, 1 }
   0xe   : > { %p1739_p9 = por %p119_p6, %p47_p1  ;;  %p1488_p13 = scmp.lt.s32.totalorder %s1659_s17, 2 }
   0xf   : > { %s1744_s26 = scalar_select %p38_p7, %s1647_s14, %s40_s21  }
  0x10   : > { %s1911_s25 = scalar_select %p1739_p9, 1, 0 }
  0x11   : > { %p1746_p11 = por %p125_p10, %p53_p3  ;;  %s151_s28 = sand.u32 1, %s1647_s14  }
  0x12   : > { %s1419_s29 = sshll.u32 %s151_s28, 6  ;;  %s1437_s30 = sshll.u32 %s1655_s16, 10 }
  0x13   : > { %s1912_s27 = scalar_select %p1746_p11, 1, 0 }
  0x14   : > { %s1757_s6 = scalar_lea.hbm %s1904_s0, %s1437_s30  ;;  %s155_s7 = scalar_lea.vmem [#allocation4], %s1419_s29 }
  0x15   : > { %s164_s8 = sshll.u32 %s155_s7, 4  ;;  %p1763_p0 = pnand %p1488_p13, %p1729_p4  ;;  %s1759_s8 = int_to_ptr.vmem [resolvable:$true] %s164_s8 }
  0x16   : > { %s1768_s10 = scalar_lea.sflag [#allocation5], %s151_s28  ;;  %s1547_s11 = scalar_lea.hbm %s1757_s6, 1024 }
  0x17   : > { %p1548_p2 = scmp.ne.s32.totalorder %s1757_s6, %s1547_s11  ;;  %p1549_p3 = pneg %p1763_p0 }
  0x18   : > { %s1552_s21 = scalar_lea.hbm %s1904_s0, 2048  ;;  %p1553_p4 = scmp.lt.u32.totalorder %s1757_s6, %s1904_s0 }
  0x19   : > { %p1550_p5 = pnand %p1549_p3, %p1548_p2  ;;  %p1554_p7 = scmp.lt.u32.totalorder %s1552_s21, %s1547_s11 }
  0x1a   : > { %p1556_p13 = scmp.lt.u32.totalorder %s1547_s11, %s1757_s6 }
  0x1b   : > { %p1551_p6 = pneg %p1550_p5  ;;  %p1555_p10 = por %p1554_p7, %p1553_p4 }
  0x1d   : > { %p1557_p12 = por %p1556_p13, %p1555_p10 }
  0x1f   : > { %p1558_p1 = pnand %p1557_p12, %p1551_p6 }
  0x21   : > { %1561 = shalt.err (!%p1558_p1)
}
  0x22   : > { %s1562_s28 = scalar_lea.vmem %s1759_s8, 1024  ;;  %s1661_s29 = smov [#allocation4]  }
  0x23   : > { %p1563_p2 = scmp.ne.s32.totalorder %s1759_s8, %s1562_s28  ;;  %s1567_s30 = sshll.u32 %s1661_s29, 4  ;;  %s1568_s30 = int_to_ptr.vmem [resolvable:$false] %s1567_s30 }
  0x24   : > { %s1569_s4 = scalar_lea.vmem %s1568_s30, 2048  ;;  %p1570_p9 = scmp.lt.s32.totalorder %s1759_s8, %s1568_s30 }
  0x25   : > { %p1565_p5 = pnand %p1563_p2, %p1549_p3  ;;  %p1571_p4 = scmp.lt.s32.totalorder %s1569_s4, %s1562_s28 }
  0x27   : > { %p1566_p11 = pneg %p1565_p5  ;;  %p1572_p7 = por %p1571_p4, %p1570_p9 }
  0x29   : > { %p1573_p10 = pnand %p1572_p7, %p1566_p11 }
  0x2b   : > { %1576 = shalt.err (!%p1573_p10)
}
  0x2c   : > { %s1662_s5 = smov 256   ;;  %s1663_s7 = smov 16  }
  0x2d   : > { %1483 = dma.hbm_to_vmem [thread:$0]  (!%p1763_p0), %s1757_s6, 1024, %s1759_s8, %s1768_s10, %s1662_s5, %s1662_s5, %s1663_s7  }
  0x2e   : > { %p172_p12 = scmp.lt.s32.totalorder %s1659_s17, 3  ;;  %p1914_p1 = scmp.ge.s32.totalorder %s1659_s17, 1 }
  0x30   : > { %p173_p3 = pnand %p1914_p1, %p172_p12 }
  0x31   : > { %s1800_s11 = sand.u32 (!%p173_p3), 1, %s1643_s13  }
  0x32   : > { %176 = sbr.rel (%p173_p3) target bundleno = 696 (0x2b8), region = 32  ;;  %s1423_s18 = sshll.u32 (!%p173_p3), %s1800_s11, 6 }
  0x33   : > { %s179_s19 = scalar_lea.sflag (!%p173_p3), [#allocation5], %s1800_s11  ;;  %s182_s21 = scalar_lea.vmem (!%p173_p3), [#allocation4], %s1423_s18 }
  0x39   : > { %1630 = dma.done.wait (%p1735_p8), %s179_s19, 1024  }
  0x3a   : > { %1632 = vsyncadd (%p1735_p8), %s179_s19, 4294966272  ;;  %v209_v0 = vld [vmem:[%s182_s21 + $0x20] sm:$0xff]  ;;  %v210_v1 = vld [vmem:[%s182_s21 + $0x28] sm:$0xff]  ;;  %v1664_v16 = vmov 0.0   ;;  %vm1078_vm0 = vcmask 261120   ;;  %vm1665_vm1 = vmmov 0   ;;  %v245_v23 = vlaneseq }
  0x3b   : > { %v205_v2 = vld [vmem:[%s182_s21] sm:$0xff]  ;;  %v219_v3 = vadd.f32 %v210_v1, %v209_v0  ;;  %v206_v4 = vld [vmem:[%s182_s21 + $0x8] sm:$0xff]  ;;  %v211_v5 = vld [vmem:[%s182_s21 + $0x30] sm:$0xff]  ;;  %v231_v15 = vmax.f32 %v209_v0, %v210_v1  ;;  %1447 = vmatprep.subr.mxu1 %v1664_v16  ;;  %1449 = vmatprep.mubr.msk.f32.mxu1 %vm1665_vm1, %v1664_v16  ;;  %vm1231_vm2 = vcmask 15360   ;;  %v1666_v20 = vmov 0.0|0.0   ;;  %s1434_s4 = sshll.u32 %s1651_s15, 4 }
  0x3c   : > { %v212_v6 = vld [vmem:[%s182_s21 + $0x38] sm:$0xff]  ;;  %v213_v7 = vadd.f32 %v206_v4, %v205_v2  ;;  %v207_v8 = vld [vmem:[%s182_s21 + $0x10] sm:$0xff]  ;;  %v225_v13 = vmax.f32 %v205_v2, %v206_v4  ;;  %1465 = vmatprep.mubr.msk.f32.mxu0 %vm1665_vm1, %v1664_v16  ;;  %v1075_v19 = vld [vmem:[%s1906_s2 + $0x8] sm:$0xff]  ;;  %1468 = vmatprep.subr.bf16.mxu0 %v1666_v20  ;;  %v246_v24 = vand.u32 127, %v245_v23  ;;  %v248_v25 = vshrl.u32 %v245_v23, 7  ;;  %s203_s5 = scalar_lea.vmem [#allocation7], %s1800_s11 }
  0x3d   : > { %v208_v9 = vld [vmem:[%s182_s21 + $0x18] sm:$0xff]  ;;  %220 = vadd.xlane.f32.xlu1 %v219_v3  ;;  %v222_v10 = vadd.f32 %v212_v6, %v211_v5  ;;  %v234_v14 = vmax.f32 %v211_v5, %v212_v6  ;;  %vm1822_vm3 = vmpackc.low %vm1231_vm2, %vm1231_vm2  ;;  %vm256_vm4 = vcmask 130112   ;;  %vm263_vm5 = vcmask 195712   ;;  %v1076_v58 = vld [vmem:[%s1906_s2 + $0x10] sm:$0xff]  ;;  %s1338_s7 = sshll.u32 %s203_s5, 4  ;;  %s1854_s21 = scalar_lea.hbm %s1907_s3, %s1434_s4  ;;  %s1856_s7 = int_to_ptr.vmem [resolvable:$true] %s1338_s7 }
  0x3e   : > { %214 = vadd.xlane.f32.xlu0 %v213_v7  ;;  %v216_v11 = vadd.f32 %v208_v9, %v207_v8  ;;  %v228_v12 = vmax.f32 %v207_v8, %v208_v9  ;;  %v1073_v17 = vld [vmem:[%s1905_s1] sm:$0x3]  ;;  %v265_v26 = vadd.s32 4294967272, %v246_v24  ;;  %v251_v27 = vadd.s32 4294967288, %v246_v24  ;;  %v1077_v59 = vld [vmem:[%s1906_s2 + $0x18] sm:$0xff]  ;;  %s1326_s24 = scalar_lea.sflag [#allocation6], %s1800_s11 }
  0x3f   : > { %1448 = vmatpush3.xpose.msk.msra.mxu1 %vm1078_vm0, %v1073_v17  ;;  %v1074_v18 = vld [vmem:[%s1906_s2] sm:$0xff]  ;;  %v258_v28 = vadd.s32 4294967280, %v246_v24  ;;  %v249_v31 = vsub.s32 %v246_v24, %v248_v25  ;;  %vm270_vm6 = vcmask 261312   ;;  %vm273_vm7 = vcmask 253952   ;;  %s1577_s6 = scalar_lea.vmem %s1856_s7, 16  ;;  %p1917_p9 = scmp.ne.s32.totalorder %s1911_s25, 0 }
  0x40   : > { %1452 = vmatprep.subr.mxu1 %v1664_v16  ;;  %v1469_v21 = vpack.c.bf16 %v1075_v19, %v1074_v18  ;;  %v268_v32 = vsub.s32 %v265_v26, %v248_v25  ;;  %v254_v33 = vsub.s32 %v251_v27, %v248_v25  ;;  %v1473_v60 = vpack.c.bf16 %v1077_v59, %v1076_v58  ;;  %p1578_p8 = scmp.ne.s32.totalorder %s1856_s7, %s1577_s6  ;;  %s1667_s15 = smov [#allocation7]  }
  0x41   : > { %223 = vadd.xlane.f32.xlu1 %v222_v10  ;;  %v261_v34 = vsub.s32 %v258_v28, %v248_v25  ;;  %s1581_s8 = sshll.u32 %s1667_s15, 4  ;;  %s1582_s8 = int_to_ptr.vmem [resolvable:$false] %s1581_s8 }
  0x42   : > { %217 = vadd.xlane.f32.xlu0 %v216_v11  ;;  %1471 = vmatpush3.bf16.xpose.msk.msra.mxu0 %vm1822_vm3, %v1469_v21  ;;  %p1579_p11 = pnand %p1578_p8, %p1917_p9  ;;  %s1583_s9 = scalar_lea.vmem %s1582_s8, 32 }
  0x43   : > { %1472 = vmatprep.subr.bf16.mxu0 %v1666_v20  ;;  %p1584_p6 = scmp.lt.s32.totalorder %s1856_s7, %s1582_s8  ;;  %p1585_p13 = scmp.lt.s32.totalorder %s1583_s9, %s1577_s6 }
  0x44   : > { %p1580_p0 = pneg %p1579_p11 }
  0x45   : > { %229 = vmax.xlane.f32.xlu1 %v228_v12  ;;  %p1586_p2 = por %p1585_p13, %p1584_p6 }
  0x46   : > { %226 = vmax.xlane.f32.xlu0 %v225_v13 }
  0x47   : > { %p1587_p5 = pnand %p1586_p2, %p1580_p0 }
  0x49   : > { %235 = vmax.xlane.f32.xlu1 %v234_v14 }
  0x4a   : > { %232 = vmax.xlane.f32.xlu0 %v231_v15  ;;  %1475 = vmatpush3.bf16.xpose.msk.msra.mxu0 %vm1822_vm3, %v1473_v60 }
  0xca   : > { %v221_v29 = vpop.xlane.xlu1 %220 }
  0xcb   : > { %v215_v30 = vpop.xlane.xlu0 %214  ;;  %v262_v40 = vrot.slane %v221_v29, %v261_v34 }
  0xcc   : > { %v250_v37 = vrot.slane %v215_v30, %v249_v31 }
  0xce   : > { %v224_v35 = vpop.xlane.xlu1 %223 }
  0xcf   : > { %v218_v36 = vpop.xlane.xlu0 %217  ;;  %v269_v38 = vrot.slane %v224_v35, %v268_v32 }
  0xd0   : > { %v255_v39 = vrot.slane %v218_v36, %v254_v33 }
  0xd2   : > { %v257_v41 = vsel %vm256_vm4, %v255_v39, %v250_v37  ;;  %v230_v42 = vpop.xlane.xlu1 %229 }
  0xd3   : > { %v264_v43 = vsel %vm263_vm5, %v262_v40, %v257_v41  ;;  %v227_v44 = vpop.xlane.xlu0 %226  ;;  %v286_v46 = vrot.slane %v230_v42, %v254_v33 }
  0xd4   : > { %v271_v45 = vsel %vm270_vm6, %v269_v38, %v264_v43  ;;  %v282_v47 = vrot.slane %v227_v44, %v249_v31 }
  0xd5   : > { %274 = vst.msk [vmem:[#allocation2] sm:$0x1] %vm273_vm7, %v271_v45 }
  0xd6   : > { %v236_v48 = vpop.xlane.xlu1 %235  ;;  %v287_v52 = vsel %vm256_vm4, %v286_v46, %v282_v47 }
  0xd7   : > { %v233_v49 = vpop.xlane.xlu0 %232  ;;  %v296_v50 = vrot.slane %v236_v48, %v268_v32 }
  0xd8   : > { %v291_v51 = vrot.slane %v233_v49, %v261_v34 }
  0xda   : > { %v292_v53 = vsel %vm263_vm5, %v291_v51, %v287_v52 }
  0xdb   : > { %v297_v54 = vsel %vm270_vm6, %v296_v50, %v292_v53 }
  0xdc   : > { %299 = vst.msk [vmem:[#allocation3] sm:$0x1] %vm273_vm7, %v297_v54  ;;  %v1070_v55 = vld [vmem:[#allocation2] sm:$0x1] }
  0xdd   : > { %v1071_v56 = vmul.f32 0.00390625, %v1070_v55 }
  0xdf   : > { %1450 = vmatmul.mubr.msk.f32.vlgmr.msra.gmra.mrb[0].mxu1 %vm1078_vm0, %v1071_v56 }
  0xe0   : > { %1453 = vmatpush3.xpose.msk.msra.mxu1 %vm1078_vm0, %v1073_v17  ;;  %1454 = vmatprep.mubr.msk.f32.mxu1 %vm1665_vm1, %v1664_v16 }
  0xe3   : > { %v1072_v57 = vld [vmem:[#allocation3] sm:$0x1] }
  0xe4   : > { %1455 = vmatmul.mubr.msk.f32.vlgmr.msra.gmra.mrb[2].mxu1 %vm1078_vm0, %v1072_v57 }
 0x1b2   : > { %v1151_v61 = vpop.f32.mrb[0].mxu1 }
 0x1b3   : > { %v1451_v62 = vpop.f32.mrb[1].mxu1  ;;  %v1155_v0 = vmax.f32 %v1151_v61, 0.0 }
 0x1b7   : > { %v1225_v63 = vpop.f32.mrb[2].mxu1 }
 0x1b8   : > { %v1229_v1 = vmax.f32 %v1225_v63, 0.0  ;;  %v1456_v2 = vpop.f32.mrb[3].mxu1 }
 0x1ba   : > { %v1230_v3 = vadd.f32 %v1229_v1, %v1155_v0 }
 0x1bc   : > { %1466 = vmatmul.mubr.msk.f32.vlgmr.msra.gmra.mrb[0].mxu0 %vm1231_vm2, %v1230_v3 }
 0x28f   : > { %v1313_v4 = vpop.f32.mrb[0].mxu0 }
 0x290   : > { %v1433_v5 = vmul.f32 -1.442695, %v1313_v4  ;;  %v1467_v6 = vpop.f32.mrb[1].mxu0 }
 0x292   : > { %1543 = vpow2.f32 %v1433_v5 }
 0x29c   : > { %v1544_v7 = vpop.eup %1543 }
 0x29d   : > { %v1320_v8 = vadd.f32 1.0, %v1544_v7 }
 0x29f   : > { %1545 = vrcp.f32 %v1320_v8 }
 0x2a9   : > { %v1546_v9 = vpop.eup %1545 }
 0x2aa   : > { %1324 = vst.msk [vmem:[%s203_s5] sm:$0x1] %vm273_vm7, %v1546_v9 }
 0x2ab   : > { %1590 = shalt.err (!%p1587_p5)
}
 0x2ac   : > { %s1591_s11 = scalar_lea.hbm %s1854_s21, 16  ;;  %s1595_s23 = scalar_lea.hbm %s1907_s3, 32 }
 0x2ad   : > { %p1592_p4 = scmp.ne.s32.totalorder %s1854_s21, %s1591_s11  ;;  %p1596_p12 = scmp.lt.u32.totalorder %s1854_s21, %s1907_s3 }
 0x2ae   : > { %p1597_p1 = scmp.lt.u32.totalorder %s1595_s23, %s1591_s11  ;;  %p1599_p8 = scmp.lt.u32.totalorder %s1591_s11, %s1854_s21 }
 0x2af   : > { %p1593_p7 = pnand %p1592_p4, %p1917_p9 }
 0x2b0   : > { %p1598_p3 = por %p1597_p1, %p1596_p12 }
 0x2b1   : > { %p1594_p10 = pneg %p1593_p7 }
 0x2b2   : > { %p1600_p11 = por %p1599_p8, %p1598_p3 }
 0x2b4   : > { %p1601_p0 = pnand %p1600_p11, %p1594_p10 }
 0x2b6   : > { %1604 = shalt.err (!%p1601_p0)
}
 0x2b7   : > { %1478 = dma.vmem_to_hbm [thread:$0]  (%p1917_p9), %s1856_s7, 16, %s1854_s21, %s1326_s24  }
 0x2b8 PF: > { %s1350_s30 = sand.u32 1, %s1639_s12   ;;  %p1918_p6 = scmp.ne.s32.totalorder %s1912_s27, 0 }
 0x2b9   : > { %p1919_p13 = scmp.ge.s32.totalorder %s1659_s17, 2  ;;  %s1351_s4 = scalar_lea.sflag [#allocation6], %s1350_s30 }
 0x2bb   : > { %p1485_p2 = pnand %p1919_p13, %p1918_p6 }
 0x2bd   : > { %1634 = dma.done.wait (!%p1485_p2), %s1351_s4, 16  }
 0x2be   : > { %1636 = vsyncadd (!%p1485_p2), %s1351_s4, 4294967280  ;;  %s19_s17 = sadd.s32 1, %s1659_s17   ;;  %s1920_s12 = smov %s1643_s13 }
 0x2bf   : > { %p16_p5 = scmp.ge.s32.totalorder %s19_s17, 4   ;;  %s1921_s13 = smov %s1647_s14 }
 0x2c0   : > { %s1922_s14 = smov %s1744_s26  ;;  %s1923_s15 = smov %s1655_s16 }
 0x2c1   : > { %s1924_s16 = smov %s1926_s20  ;;  %18 = sbr.rel (!%p16_p5) target bundleno = 6 (0x6), region = 89 }
 0x2c8   :  { %1355 = vsyncpa [#allocation5], 1 }
 0x2c9   :  { %1357 = vsyncpa [#allocation5 + $0x1], 1 }
 0x2ca   :  { %1358 = vsyncpa [#allocation6], 1 }
 0x2cb   :  { %1360 = vsyncpa [#allocation6 + $0x1], 1 }

</bundles_post_ra>
